<compile_context>
chip_gen: v6e
topology: v6e:2x2x1
jax: 0.10.0
libtpu: 0.0.40
codegen_flags: <defaults>
</compile_context>

<pallas_src>
import functools

import numpy as np
import jax
import jax.numpy as jnp
from jax.experimental import pallas as pl
from jax.experimental.pallas import tpu as pltpu


def _recon_loss_kernel(*refs, tb, h, w, wide_w, wide_h):
    f32 = jnp.float32
    bf16 = jnp.bfloat16

    fin_ref, fpred_ref, m_ref, it_ref = refs[:4]
    idx = 4
    if wide_w:
        awc_ref = refs[idx]; idx += 1
    else:
        awr_ref, awd_ref, aws_ref = refs[idx:idx + 3]; idx += 3
    if wide_h:
        ahc_ref = refs[idx]; idx += 1
    else:
        ahr_ref, ahd_ref, ahs_ref = refs[idx:idx + 3]; idx += 3
    out_ref = refs[idx]

    # Mask combine per channel, straight from the bf16 refs (one multiply per
    # element, no full (TB,2,H,W) intermediate):
    #   F = Fin*M + Fpred*(1-M) == Fpred + (Fin - Fpred)*M
    xr = (fpred_ref[:, 0] +
          (fin_ref[:, 0] - fpred_ref[:, 0]) * m_ref[:, 0]).reshape(tb * h, w)
    xi = (fpred_ref[:, 1] +
          (fin_ref[:, 1] - fpred_ref[:, 1]) * m_ref[:, 1]).reshape(tb * h, w)

    # ---- Stage 1: IDFT along W as (TB*H, W) @ (W, *) bf16 MXU matmuls ----
    if wide_w:
        # 2 matmuls with wide [Ar | Ai] RHS (fills the 256-wide MXU).
        p = jnp.dot(xr, awc_ref[...], preferred_element_type=f32)   # (TB*H, 2W)
        q = jnp.dot(xi, awc_ref[...], preferred_element_type=f32)
        tr = p[:, :w] - q[:, w:]
        ti = p[:, w:] + q[:, :w]
    else:
        # Gauss/Karatsuba 3-mult complex matmul.
        xs = (xr.astype(f32) + xi.astype(f32)).astype(bf16)
        k1 = jnp.dot(xs, awr_ref[...], preferred_element_type=f32)
        k2 = jnp.dot(xr, awd_ref[...], preferred_element_type=f32)
        k3 = jnp.dot(xi, aws_ref[...], preferred_element_type=f32)
        tr = k1 - k3                                                # (TB*H, W)
        ti = k1 + k2

    # ---- Per-batch transpose in bf16 (XLU) so stage 2 is tall-skinny ----
    def _t(x):
        return jnp.transpose(x.reshape(tb, h, w), (0, 2, 1)).reshape(tb * w, h)

    ur = _t(tr.astype(bf16))
    ui = _t(ti.astype(bf16))

    # ---- Stage 2: IDFT along H as (TB*W, H) @ (H, *); result stays as Y^T --
    if wide_h:
        pg = jnp.dot(ur, ahc_ref[...], preferred_element_type=f32)  # (TB*W, 2H)
        qg = jnp.dot(ui, ahc_ref[...], preferred_element_type=f32)
        yr = pg[:, :h] - qg[:, h:]
        yi = pg[:, h:] + qg[:, :h]
    else:
        us = _t((tr + ti).astype(bf16))     # sum formed in f32, moved as bf16
        g1 = jnp.dot(us, ahr_ref[...], preferred_element_type=f32)
        g2 = jnp.dot(ur, ahd_ref[...], preferred_element_type=f32)
        g3 = jnp.dot(ui, ahs_ref[...], preferred_element_type=f32)
        yr = g1 - g3                                                # (TB*W, H)
        yi = g1 + g2

    # ---- Fused epilogue: |.| -> diff -> square -> lane-dense VPU partial ----
    ip = jnp.sqrt(yr * yr + yi * yi)                    # (TB*W, H) f32
    diff = ip - it_ref[...].reshape(tb * w, h)          # I^T block is f32
    d2 = diff * diff

    rows = tb * w
    if rows % 8 == 0:
        # Layout-preserving slab reduction: pure VPU adds, no XLU reduce.
        out_ref[0] = jnp.sum(d2.reshape(rows // 8, 8, h), axis=0)
    else:
        s = jnp.sum(d2)
        r = jax.lax.broadcasted_iota(jnp.int32, (8, h), 0)
        c = jax.lax.broadcasted_iota(jnp.int32, (8, h), 1)
        out_ref[0] = jnp.where((r == 0) & (c == 0), s, f32(0))


def _shifted_idft_mats(n, wide):
    """bf16 IDFT matrix along one axis with the spatial ifftshift folded in.

    wide=True : single [Ar | Ai] matrix of shape (n, 2n) (2-matmul form).
    wide=False: Gauss 3-mult trio (Ar, Ai-Ar, Ar+Ai), each (n, n).
    """
    k = np.arange(n)
    a = np.exp(2j * np.pi * np.outer(k, k) / n) / n     # symmetric, 1/n norm
    idx = (np.arange(n) - n // 2) % n                   # ifftshift on this axis
    a = a[idx, :]
    if wide:
        return (jnp.asarray(np.concatenate([a.real, a.imag], axis=1),
                            jnp.bfloat16),)
    ar, ai = a.real, a.imag
    return (jnp.asarray(ar, jnp.bfloat16),
            jnp.asarray(ai - ar, jnp.bfloat16),
            jnp.asarray(ar + ai, jnp.bfloat16))


def _device_kind():
    try:
        return jax.devices()[0].device_kind.lower()
    except Exception:
        return ""


def _pick_tb(b, h, w, is_v7):
    """Largest divisor of B that (a) fits the generation-aware VMEM budget,
    (b) gives a reasonable MXU M dim, and (c) leaves >=2 (>=4 on v7x) grid
    steps for pipelining / megacore sharding."""
    budget = (40 << 20) if is_v7 else (72 << 20)
    # Per-image per-step bytes: double-buffered bf16 Fin/Fpred/M + f32 I tile
    # (2*(3*4 + 4) = 32 B/px) + ~48 B/px of live f32/bf16 intermediates.
    per_img = 80 * h * w
    cap = max(1, budget // per_img)
    cap = min(cap, max(1, 512 // max(h, w)))               # MXU M-dim target
    cap = min(cap, max(1, b // (4 if is_v7 else 2)))       # >=2 (>=4) steps
    tb = 1
    for d in range(1, min(b, cap) + 1):
        if b % d == 0:
            tb = d
    return tb


def _const_spec(shape):
    # Constant index_map -> DMA'd once; single-buffer to save VMEM headroom.
    try:
        return pl.BlockSpec(shape, lambda i: (0, 0),
                            pipeline_mode=pl.Buffered(1))
    except TypeError:   # older jax without pipeline_mode support
        return pl.BlockSpec(shape, lambda i: (0, 0))


def recon_loss(Fin, Fpred, M, I):
    B, C, H, W = Fin.shape
    assert C == 2

    kind = _device_kind()
    is_v5 = "v5" in kind
    is_v7 = "v7" in kind

    # Wide [Ar|Ai] 2-matmul form fills the 256-wide MXU of v6e/v7x when the
    # contraction dim is <=128; keep the Gauss 3-mult trick otherwise / on v5e.
    wide_w = (W <= 128) and not is_v5
    wide_h = (H <= 128) and not is_v5
    mats_w = _shifted_idft_mats(W, wide_w)
    mats_h = _shifted_idft_mats(H, wide_h)

    tb = _pick_tb(B, H, W, is_v7)
    g = B // tb

    # Stream the big inputs as bf16 (mask combine + MXU run in bf16 anyway);
    # keep the target I in f32 for the diff accuracy.
    bf16 = jnp.bfloat16
    Fin_b, Fpred_b, M_b = Fin.astype(bf16), Fpred.astype(bf16), M.astype(bf16)

    # torch.fft.ifftshift with dim=None also rolls the BATCH dim by B//2, so
    # F batch b pairs with I batch (b - B//2) % B.  Fold that roll into the I
    # index_map when TB | B//2 (saves a full HBM read+write of I); otherwise
    # fall back to a wrapper-side roll.  The kernel produces |ifft2| in
    # transposed layout (stage 2 acts on T^T), so I is pre-transposed.
    I_t = jnp.transpose(I, (0, 2, 1))
    if (B // 2) % tb == 0:
        shift_blocks = (g - ((B // 2) // tb) % g) % g
        i_index_map = lambda i: ((i + shift_blocks) % g, 0, 0)
    else:
        I_t = jnp.roll(I_t, B // 2, axis=0)
        i_index_map = lambda i: (i, 0, 0)

    in_specs = [
        pl.BlockSpec((tb, 2, H, W), lambda i: (i, 0, 0, 0)),   # Fin   (bf16)
        pl.BlockSpec((tb, 2, H, W), lambda i: (i, 0, 0, 0)),   # Fpred (bf16)
        pl.BlockSpec((tb, 2, H, W), lambda i: (i, 0, 0, 0)),   # M     (bf16)
        pl.BlockSpec((tb, W, H), i_index_map),                 # I^T   (f32)
    ]
    in_specs += [_const_spec(m.shape) for m in mats_w]
    in_specs += [_const_spec(m.shape) for m in mats_h]

    kernel = functools.partial(_recon_loss_kernel, tb=tb, h=H, w=W,
                               wide_w=wide_w, wide_h=wide_h)
    partials = pl.pallas_call(
        kernel,
        out_shape=jax.ShapeDtypeStruct((g, 8, H), jnp.float32),
        grid_spec=pltpu.PrefetchScalarGridSpec(
            num_scalar_prefetch=0,
            grid=(g,),
            in_specs=in_specs,
            out_specs=pl.BlockSpec((1, 8, H), lambda i: (i, 0, 0)),
        ),
        compiler_params=pltpu.CompilerParams(
            dimension_semantics=("parallel",),
            vmem_limit_bytes=(52 << 20) if is_v7 else (96 << 20)),
    )(Fin_b, Fpred_b, M_b, I_t, *mats_w, *mats_h)

    # Tiny final cross-lane reduction + MSE mean normalization outside kernel.
    return jnp.sum(partials) / jnp.float32(B * H * W)


def recon_loss_ref(Fin, Fpred, M, I):
    """Pure-JAX reference mirroring the PyTorch module exactly."""
    Mp = 1.0 - M
    F = Fin * M + Fpred * Mp
    Fc = F[:, 0, :, :] + 1j * F[:, 1, :, :]
    Ipred = jnp.abs(jnp.fft.ifft2(jnp.fft.ifftshift(Fc)))   # shifts ALL dims
    return jnp.mean((Ipred - I) ** 2)


if __name__ == "__main__":
    B, H, W = 2, 16, 16
    key = jax.random.PRNGKey(0)
    k1, k2, k3, k4 = jax.random.split(key, 4)

    Fin = jax.random.normal(k1, (B, 2, H, W), dtype=jnp.float32)
    Fpred = jax.random.normal(k2, (B, 2, H, W), dtype=jnp.float32)
    M = jax.random.bernoulli(k3, 0.5, (B, 2, H, W)).astype(jnp.float32)
    I = jax.random.uniform(k4, (B, H, W), dtype=jnp.float32)

    loss = jax.block_until_ready(jax.jit(recon_loss)(Fin, Fpred, M, I))
    ref = jax.block_until_ready(recon_loss_ref(Fin, Fpred, M, I))

    assert np.allclose(np.asarray(loss), np.asarray(ref),
                       rtol=5e-3, atol=1e-5), (loss, ref)
    print("KERNEL_OK")
</pallas_src>

<mosaic_0001>
module attributes {stable_mosaic.version = 11 : i64} {
  func.func @_recon_loss_kernel(%arg0: i32, %arg1: memref<1x2x16x16xbf16, #tpu.memory_space<vmem>>, %arg2: memref<1x2x16x16xbf16, #tpu.memory_space<vmem>>, %arg3: memref<1x2x16x16xbf16, #tpu.memory_space<vmem>>, %arg4: memref<1x16x16xf32, #tpu.memory_space<vmem>>, %arg5: memref<16x32xbf16, #tpu.memory_space<vmem>>, %arg6: memref<16x32xbf16, #tpu.memory_space<vmem>>, %arg7: memref<1x8x16xf32, #tpu.memory_space<vmem>>) attributes {dimension_semantics = [#tpu.dimension_semantics<parallel>], iteration_bounds = array<i64: 2>, scalar_prefetch = 0 : i64, scratch_operands = 0 : i64, tpu.core_type = #tpu.core_type<tc>, window_params = [{transform_indices = @transform_0, window_bounds = array<i64: 1, 2, 16, 16>}, {transform_indices = @transform_1, window_bounds = array<i64: 1, 2, 16, 16>}, {transform_indices = @transform_2, window_bounds = array<i64: 1, 2, 16, 16>}, {transform_indices = @transform_3, window_bounds = array<i64: 1, 16, 16>}, {pipeline_mode = #tpu.pipeline_mode<synchronous>, transform_indices = @transform_4, window_bounds = array<i64: 16, 32>}, {pipeline_mode = #tpu.pipeline_mode<synchronous>, transform_indices = @transform_5, window_bounds = array<i64: 16, 32>}, {transform_indices = @transform_6, window_bounds = array<i64: 1, 8, 16>}]} {
    %c0 = arith.constant 0 : index
    %c0_0 = arith.constant 0 : index
    %c0_1 = arith.constant 0 : index
    %c0_2 = arith.constant 0 : index
    %0 = vector.load %arg2[%c0, %c0_0, %c0_1, %c0_2] : memref<1x2x16x16xbf16, #tpu.memory_space<vmem>>, vector<1x1x16x16xbf16>
    %1 = vector.shape_cast %0 : vector<1x1x16x16xbf16> to vector<1x16x16xbf16>
    %c0_3 = arith.constant 0 : index
    %c0_4 = arith.constant 0 : index
    %c0_5 = arith.constant 0 : index
    %c0_6 = arith.constant 0 : index
    %2 = vector.load %arg1[%c0_3, %c0_4, %c0_5, %c0_6] : memref<1x2x16x16xbf16, #tpu.memory_space<vmem>>, vector<1x1x16x16xbf16>
    %3 = vector.shape_cast %2 : vector<1x1x16x16xbf16> to vector<1x16x16xbf16>
    %c0_7 = arith.constant 0 : index
    %c0_8 = arith.constant 0 : index
    %c0_9 = arith.constant 0 : index
    %c0_10 = arith.constant 0 : index
    %4 = vector.load %arg2[%c0_7, %c0_8, %c0_9, %c0_10] : memref<1x2x16x16xbf16, #tpu.memory_space<vmem>>, vector<1x1x16x16xbf16>
    %5 = vector.shape_cast %4 : vector<1x1x16x16xbf16> to vector<1x16x16xbf16>
    %6 = arith.subf %3, %5 : vector<1x16x16xbf16>
    %c0_11 = arith.constant 0 : index
    %c0_12 = arith.constant 0 : index
    %c0_13 = arith.constant 0 : index
    %c0_14 = arith.constant 0 : index
    %7 = vector.load %arg3[%c0_11, %c0_12, %c0_13, %c0_14] : memref<1x2x16x16xbf16, #tpu.memory_space<vmem>>, vector<1x1x16x16xbf16>
    %8 = vector.shape_cast %7 : vector<1x1x16x16xbf16> to vector<1x16x16xbf16>
    %9 = arith.mulf %6, %8 : vector<1x16x16xbf16>
    %10 = arith.addf %1, %9 : vector<1x16x16xbf16>
    %11 = vector.shape_cast %10 : vector<1x16x16xbf16> to vector<16x16xbf16>
    %c0_15 = arith.constant 0 : index
    %c1 = arith.constant 1 : index
    %c0_16 = arith.constant 0 : index
    %c0_17 = arith.constant 0 : index
    %12 = vector.load %arg2[%c0_15, %c1, %c0_16, %c0_17] : memref<1x2x16x16xbf16, #tpu.memory_space<vmem>>, vector<1x1x16x16xbf16>
    %13 = vector.shape_cast %12 : vector<1x1x16x16xbf16> to vector<1x16x16xbf16>
    %c0_18 = arith.constant 0 : index
    %c1_19 = arith.constant 1 : index
    %c0_20 = arith.constant 0 : index
    %c0_21 = arith.constant 0 : index
    %14 = vector.load %arg1[%c0_18, %c1_19, %c0_20, %c0_21] : memref<1x2x16x16xbf16, #tpu.memory_space<vmem>>, vector<1x1x16x16xbf16>
    %15 = vector.shape_cast %14 : vector<1x1x16x16xbf16> to vector<1x16x16xbf16>
    %c0_22 = arith.constant 0 : index
    %c1_23 = arith.constant 1 : index
    %c0_24 = arith.constant 0 : index
    %c0_25 = arith.constant 0 : index
    %16 = vector.load %arg2[%c0_22, %c1_23, %c0_24, %c0_25] : memref<1x2x16x16xbf16, #tpu.memory_space<vmem>>, vector<1x1x16x16xbf16>
    %17 = vector.shape_cast %16 : vector<1x1x16x16xbf16> to vector<1x16x16xbf16>
    %18 = arith.subf %15, %17 : vector<1x16x16xbf16>
    %c0_26 = arith.constant 0 : index
    %c1_27 = arith.constant 1 : index
    %c0_28 = arith.constant 0 : index
    %c0_29 = arith.constant 0 : index
    %19 = vector.load %arg3[%c0_26, %c1_27, %c0_28, %c0_29] : memref<1x2x16x16xbf16, #tpu.memory_space<vmem>>, vector<1x1x16x16xbf16>
    %20 = vector.shape_cast %19 : vector<1x1x16x16xbf16> to vector<1x16x16xbf16>
    %21 = arith.mulf %18, %20 : vector<1x16x16xbf16>
    %22 = arith.addf %13, %21 : vector<1x16x16xbf16>
    %23 = vector.shape_cast %22 : vector<1x16x16xbf16> to vector<16x16xbf16>
    %c0_30 = arith.constant 0 : index
    %c0_31 = arith.constant 0 : index
    %24 = vector.load %arg5[%c0_30, %c0_31] : memref<16x32xbf16, #tpu.memory_space<vmem>>, vector<16x32xbf16>
    %cst = arith.constant dense<0.000000e+00> : vector<16x32xf32>
    %25 = tpu.matmul %11, %24, %cst {dimension_numbers = #tpu.dot_dimension_numbers<[1], [0], [0], [1], [0, 0, 1, 1], [], []>} : vector<16x16xbf16>, vector<16x32xbf16>, vector<16x32xf32> -> vector<16x32xf32>
    %c0_32 = arith.constant 0 : index
    %c0_33 = arith.constant 0 : index
    %26 = vector.load %arg5[%c0_32, %c0_33] : memref<16x32xbf16, #tpu.memory_space<vmem>>, vector<16x32xbf16>
    %cst_34 = arith.constant dense<0.000000e+00> : vector<16x32xf32>
    %27 = tpu.matmul %23, %26, %cst_34 {dimension_numbers = #tpu.dot_dimension_numbers<[1], [0], [0], [1], [0, 0, 1, 1], [], []>} : vector<16x16xbf16>, vector<16x32xbf16>, vector<16x32xf32> -> vector<16x32xf32>
    %28 = vector.extract_strided_slice %25 {offsets = [0, 0], sizes = [16, 16], strides = [1, 1]} : vector<16x32xf32> to vector<16x16xf32>
    %29 = vector.extract_strided_slice %27 {offsets = [0, 16], sizes = [16, 16], strides = [1, 1]} : vector<16x32xf32> to vector<16x16xf32>
    %30 = arith.subf %28, %29 : vector<16x16xf32>
    %31 = vector.extract_strided_slice %25 {offsets = [0, 16], sizes = [16, 16], strides = [1, 1]} : vector<16x32xf32> to vector<16x16xf32>
    %32 = vector.extract_strided_slice %27 {offsets = [0, 0], sizes = [16, 16], strides = [1, 1]} : vector<16x32xf32> to vector<16x16xf32>
    %33 = arith.addf %31, %32 : vector<16x16xf32>
    %34 = arith.truncf %30 : vector<16x16xf32> to vector<16x16xbf16>
    %35 = vector.shape_cast %34 : vector<16x16xbf16> to vector<1x16x16xbf16>
    %36 = tpu.transpose %35, [0, 2, 1] : vector<1x16x16xbf16> -> vector<1x16x16xbf16>
    %37 = vector.shape_cast %36 : vector<1x16x16xbf16> to vector<16x16xbf16>
    %38 = arith.truncf %33 : vector<16x16xf32> to vector<16x16xbf16>
    %39 = vector.shape_cast %38 : vector<16x16xbf16> to vector<1x16x16xbf16>
    %40 = tpu.transpose %39, [0, 2, 1] : vector<1x16x16xbf16> -> vector<1x16x16xbf16>
    %41 = vector.shape_cast %40 : vector<1x16x16xbf16> to vector<16x16xbf16>
    %c0_35 = arith.constant 0 : index
    %c0_36 = arith.constant 0 : index
    %42 = vector.load %arg6[%c0_35, %c0_36] : memref<16x32xbf16, #tpu.memory_space<vmem>>, vector<16x32xbf16>
    %cst_37 = arith.constant dense<0.000000e+00> : vector<16x32xf32>
    %43 = tpu.matmul %37, %42, %cst_37 {dimension_numbers = #tpu.dot_dimension_numbers<[1], [0], [0], [1], [0, 0, 1, 1], [], []>} : vector<16x16xbf16>, vector<16x32xbf16>, vector<16x32xf32> -> vector<16x32xf32>
    %c0_38 = arith.constant 0 : index
    %c0_39 = arith.constant 0 : index
    %44 = vector.load %arg6[%c0_38, %c0_39] : memref<16x32xbf16, #tpu.memory_space<vmem>>, vector<16x32xbf16>
    %cst_40 = arith.constant dense<0.000000e+00> : vector<16x32xf32>
    %45 = tpu.matmul %41, %44, %cst_40 {dimension_numbers = #tpu.dot_dimension_numbers<[1], [0], [0], [1], [0, 0, 1, 1], [], []>} : vector<16x16xbf16>, vector<16x32xbf16>, vector<16x32xf32> -> vector<16x32xf32>
    %46 = vector.extract_strided_slice %43 {offsets = [0, 0], sizes = [16, 16], strides = [1, 1]} : vector<16x32xf32> to vector<16x16xf32>
    %47 = vector.extract_strided_slice %45 {offsets = [0, 16], sizes = [16, 16], strides = [1, 1]} : vector<16x32xf32> to vector<16x16xf32>
    %48 = arith.subf %46, %47 : vector<16x16xf32>
    %49 = vector.extract_strided_slice %43 {offsets = [0, 16], sizes = [16, 16], strides = [1, 1]} : vector<16x32xf32> to vector<16x16xf32>
    %50 = vector.extract_strided_slice %45 {offsets = [0, 0], sizes = [16, 16], strides = [1, 1]} : vector<16x32xf32> to vector<16x16xf32>
    %51 = arith.addf %49, %50 : vector<16x16xf32>
    %52 = arith.mulf %48, %48 : vector<16x16xf32>
    %53 = arith.mulf %51, %51 : vector<16x16xf32>
    %54 = arith.addf %52, %53 : vector<16x16xf32>
    %55 = math.sqrt %54 : vector<16x16xf32>
    %c0_41 = arith.constant 0 : index
    %c0_42 = arith.constant 0 : index
    %c0_43 = arith.constant 0 : index
    %56 = vector.load %arg4[%c0_41, %c0_42, %c0_43] : memref<1x16x16xf32, #tpu.memory_space<vmem>>, vector<1x16x16xf32>
    %57 = vector.shape_cast %56 : vector<1x16x16xf32> to vector<16x16xf32>
    %58 = arith.subf %55, %57 : vector<16x16xf32>
    %59 = arith.mulf %58, %58 : vector<16x16xf32>
    %60 = vector.shape_cast %59 : vector<16x16xf32> to vector<2x8x16xf32>
    %cst_44 = arith.constant dense<0.000000e+00> : vector<8x16xf32>
    %61 = vector.multi_reduction <add>, %60, %cst_44 [0] : vector<2x8x16xf32> to vector<8x16xf32>
    %c0_45 = arith.constant 0 : index
    %c0_46 = arith.constant 0 : index
    %c0_47 = arith.constant 0 : index
    %62 = vector.load %arg7[%c0_45, %c0_46, %c0_47] : memref<1x8x16xf32, #tpu.memory_space<vmem>>, vector<1x8x16xf32>
    %63 = vector.shape_cast %62 : vector<1x8x16xf32> to vector<8x16xf32>
    %64 = vector.shape_cast %61 : vector<8x16xf32> to vector<1x8x16xf32>
    tpu.vector_store %arg7[%c0_45, %c0_46, %c0_47], %64 {strides = array<i32>} : memref<1x8x16xf32, #tpu.memory_space<vmem>>, vector<1x8x16xf32>,
    return
  }
  func.func @transform_0(%arg0: i32) -> (i32, i32, i32, i32) {
    %c0_i32 = arith.constant 0 : i32
    %c0_i32_0 = arith.constant 0 : i32
    %c0_i32_1 = arith.constant 0 : i32
    %c0_i32_2 = arith.constant 0 : i32
    return %arg0, %c0_i32, %c0_i32_0, %c0_i32_1 : i32, i32, i32, i32
  }
  func.func @transform_1(%arg0: i32) -> (i32, i32, i32, i32) {
    %c0_i32 = arith.constant 0 : i32
    %c0_i32_0 = arith.constant 0 : i32
    %c0_i32_1 = arith.constant 0 : i32
    %c0_i32_2 = arith.constant 0 : i32
    return %arg0, %c0_i32, %c0_i32_0, %c0_i32_1 : i32, i32, i32, i32
  }
  func.func @transform_2(%arg0: i32) -> (i32, i32, i32, i32) {
    %c0_i32 = arith.constant 0 : i32
    %c0_i32_0 = arith.constant 0 : i32
    %c0_i32_1 = arith.constant 0 : i32
    %c0_i32_2 = arith.constant 0 : i32
    return %arg0, %c0_i32, %c0_i32_0, %c0_i32_1 : i32, i32, i32, i32
  }
  func.func @transform_3(%arg0: i32) -> (i32, i32, i32) {
    %c1_i32 = arith.constant 1 : i32
    %0 = arith.addi %arg0, %c1_i32 : i32
    %c2_i32 = arith.constant 2 : i32
    %c0_i32 = arith.constant 0 : i32
    %1 = arith.cmpi eq, %c2_i32, %c0_i32 : i32
    %c1_i32_0 = arith.constant 1 : i32
    %2 = arith.select %1, %c1_i32_0, %c2_i32 : i32
    %3 = arith.remsi %0, %2 : i32
    %c0_i32_1 = arith.constant 0 : i32
    %4 = arith.cmpi ne, %3, %c0_i32_1 : i32
    %c0_i32_2 = arith.constant 0 : i32
    %5 = arith.cmpi slt, %3, %c0_i32_2 : i32
    %c0_i32_3 = arith.constant 0 : i32
    %6 = arith.cmpi slt, %2, %c0_i32_3 : i32
    %7 = arith.xori %5, %6 : i1
    %8 = arith.andi %7, %4 : i1
    %9 = arith.addi %3, %2 : i32
    %10 = arith.select %8, %9, %3 : i32
    %c0_i32_4 = arith.constant 0 : i32
    %c0_i32_5 = arith.constant 0 : i32
    %c0_i32_6 = arith.constant 0 : i32
    return %10, %c0_i32_4, %c0_i32_5 : i32, i32, i32
  }
  func.func @transform_4(%arg0: i32) -> (i32, i32) {
    %c0_i32 = arith.constant 0 : i32
    %c0_i32_0 = arith.constant 0 : i32
    %c0_i32_1 = arith.constant 0 : i32
    return %c0_i32, %c0_i32_0 : i32, i32
  }
  func.func @transform_5(%arg0: i32) -> (i32, i32) {
    %c0_i32 = arith.constant 0 : i32
    %c0_i32_0 = arith.constant 0 : i32
    %c0_i32_1 = arith.constant 0 : i32
    return %c0_i32, %c0_i32_0 : i32, i32
  }
  func.func @transform_6(%arg0: i32) -> (i32, i32, i32) {
    %c0_i32 = arith.constant 0 : i32
    %c0_i32_0 = arith.constant 0 : i32
    %c0_i32_1 = arith.constant 0 : i32
    return %arg0, %c0_i32, %c0_i32_0 : i32, i32, i32
  }
}

</mosaic_0001>

<bundles_post_ra>
// kernel: recon_loss.1
= control target key start
LH: loop header
LB: loop body
LE: loop exit
PB: predicated region body
PF: predicated region fallthrough
CT: control target
= control target key end

     0   :  { %s974_s21 = smov 0   ;;  %s1037_s0 = inlined_call_operand.vmem [shape: bf16[2,2,16,16], index: 0, kind: input, shape index: {}]   ;;  %s1038_s1 = inlined_call_operand.vmem [shape: bf16[2,2,16,16], index: 1, kind: input, shape index: {}]   ;;  %s1039_s2 = inlined_call_operand.vmem [shape: bf16[2,2,16,16], index: 2, kind: input, shape index: {}]   ;;  %s1040_s3 = inlined_call_operand.vmem [shape: f32[2,16,16], index: 3, kind: input, shape index: {}]   ;;  %s1041_s4 = inlined_call_operand.vmem [shape: bf16[16,32], index: 4, kind: input, shape index: {}, may-alias: {4,5}]   ;;  %s1042_s5 = inlined_call_operand.vmem [shape: bf16[16,32], index: 5, kind: input, shape index: {}, may-alias: {4,5}]   ;;  %s1043_s6 = inlined_call_operand.vmem [shape: f32[2,8,16], index: 6, kind: output, shape index: {}]  }
   0x1 LB: > { %s980_s22 = sadd.s32 4294967295, %s933_s21   ;;  %p843_p0 = scmp.ge.s32.totalorder %s933_s21, 1  ;;  %s933_s21 = sphi %s974_s21, %s16_s21  }
   0x2   : > { %p294_p1 = scmp.lt.s32.totalorder %s933_s21, 3 }
   0x4   : > { %p295_p2 = pnand %p843_p0, %p294_p1 }
   0x5   : > { %p351_p3 = scmp.lt.s32.totalorder (!%p295_p2), %s980_s22, 1  ;;  %s937_s12 = smov (!%p295_p2), 16  }
   0x6   : > { %298 = sbr.rel (%p295_p2) target bundleno = 1014 (0x3f6), region = 44  ;;  %s938_s13 = smov (!%p295_p2), 112  }
   0x7   : > { %s366_s16 = sadd.s32 (!%p295_p2), 1, %s980_s22 }
   0x8   : > { %s368_s17 = ssub.s32 (!%p295_p2), 0, %s366_s16  ;;  %p367_p4 = scmp.lt.s32.totalorder (!%p295_p2), %s366_s16, 0 }
   0x9   : > { %s850_s18 = smin.u32 (!%p295_p2), %s368_s17, %s366_s16 }
   0xa   : > { %s370_s19 = sand.u32 (!%p295_p2), 1, %s850_s18  }
   0xb   : > { %v921_v0 = vld [vmem:[%s1041_s4] sm:$0xff]   ;;  %v935_v1 = vmov 0.0   ;;  %vm936_vm0 = vmmov 0   ;;  %s990_s25 = scalar_select %p351_p3, %s980_s22, 1  ;;  %vm442_vm1 = vcmask 130048  }
   0xc   : > { %890 = vmatprep.subr.bf16.mxu1 %v935_v1  ;;  %884 = vmatprep.subr.bf16.mxu0 %v935_v1  ;;  %v922_v38 = vld [vmem:[%s1042_s5] sm:$0xff]   ;;  %s371_s20 = ssub.s32 0, %s370_s19 }
   0xd   : > { %891 = vmatpush3.bf16.msra.mxu1 %v921_v0  ;;  %892 = vmatprep.mubr.msk.bf16.mxu1 %vm936_vm0, %v935_v1  ;;  %s872_s26 = sshll.u32 %s990_s25, 4  ;;  %s1045_s20 = smov (!%p367_p4, %s371_s20), %s370_s19 }
   0xe   : > { %885 = vmatpush3.bf16.msra.mxu0 %v921_v0  ;;  %886 = vmatprep.mubr.msk.bf16.mxu0 %vm936_vm0, %v935_v1  ;;  %s355_s29 = scalar_lea.vmem %s1037_s0, %s872_s26  ;;  %s360_s8 = scalar_lea.vmem %s1038_s1, %s872_s26 }
   0xf   : > { %902 = vmatprep.subr.bf16.mxu1 %v935_v1  ;;  %896 = vmatprep.subr.bf16.mxu0 %v935_v1  ;;  %s365_s11 = scalar_lea.vmem %s1039_s2, %s872_s26  ;;  %v856_v2 = vld [vmem:[%s360_s8 + $0x8] sm:$0xf]  ;;  %v857_v3 = vld [vmem:[%s360_s8 + $0xc] sm:$0xf]  ;;  %v402_v10 = vld [vmem:[%s360_s8] sm:$0xf] }
  0x10   : > { %v858_v4 = vld [vmem:[%s355_s29 + $0x8] sm:$0xf]  ;;  %v859_v5 = vld [vmem:[%s355_s29 + $0xc] sm:$0xf]  ;;  %v403_v11 = vld [vmem:[%s360_s8 + $0x4] sm:$0xf] }
  0x11   : > { %v420_v6 = vsub.bf16 %v858_v4, %v856_v2  ;;  %v860_v7 = vld [vmem:[%s365_s11 + $0x8] sm:$0xf]  ;;  %v861_v8 = vld [vmem:[%s365_s11 + $0xc] sm:$0xf]  ;;  %v421_v9 = vsub.bf16 %v859_v5, %v857_v3  ;;  %v404_v12 = vld [vmem:[%s355_s29] sm:$0xf] }
  0x12   : > { %v405_v14 = vld [vmem:[%s355_s29 + $0x4] sm:$0xf]  ;;  %v406_v15 = vsub.bf16 %v404_v12, %v402_v10  ;;  %v408_v16 = vld [vmem:[%s365_s11] sm:$0xf]  ;;  %p852_p5 = scmp.lt.s32.totalorder %s1045_s20, 0  ;;  %s377_s23 = sadd.s32 2, %s1045_s20 }
  0x13   : > { %v425_v13 = vmul.bf16 %v860_v7, %v420_v6  ;;  %v409_v17 = vld [vmem:[%s365_s11 + $0x4] sm:$0xf]  ;;  %v426_v18 = vmul.bf16 %v861_v8, %v421_v9  ;;  %v407_v19 = vsub.bf16 %v405_v14, %v403_v11  ;;  %s855_s28 = sshll.u32 %s990_s25, 3 }
  0x14   : > { %v410_v21 = vmul.bf16 %v408_v16, %v406_v15  ;;  %s1047_s23 = smov (!%p852_p5, %s377_s23), %s1045_s20  ;;  %s400_s7 = scalar_lea.vmem %s1043_s6, %s855_s28 }
  0x15   : > { %v427_v20 = vadd.bf16 %v856_v2, %v425_v13  ;;  %v428_v22 = vadd.bf16 %v857_v3, %v426_v18  ;;  %v411_v23 = vmul.bf16 %v409_v17, %v407_v19  ;;  %p379_p6 = scmp.lt.s32.totalorder %s1047_s23, 1 }
  0x16   : > { %v412_v24 = vadd.bf16 %v410_v21, %v402_v10 }
  0x17   : > { %v865_v25 = vcombine.low %v427_v20, %v428_v22  ;;  %v413_v26 = vadd.bf16 %v411_v23, %v403_v11  ;;  %s1049_s23 = smov (!%p379_p6, %s1047_s23), 1 }
  0x18   : > { %s875_s22 = sshll.u32 %s1049_s23, 4 }
  0x19   : > { %893 = vmatmul.mubr.msk.bf16.vlgmr.msra.gmra.mxu1 %vm442_vm1, %v865_v25  ;;  %v862_v27 = vcombine.low %v412_v24, %v413_v26  ;;  %s383_s27 = scalar_lea.vmem %s1040_s3, %s875_s22 }
  0x1a   : > { %904 = vmatprep.mubr.msk.bf16.mxu1 %vm936_vm0, %v935_v1  ;;  %903 = vmatpush3.bf16.msra.mxu1 %v922_v38  ;;  %v734_v12 = vld [vmem:[%s383_s27] sm:$0xff]  ;;  %v735_v19 = vld [vmem:[%s383_s27 + $0x8] sm:$0xff] }
  0x1b   : > { %887 = vmatmul.mubr.msk.bf16.vlgmr.msra.gmra.mxu0 %vm442_vm1, %v862_v27 }
  0x1c   : > { %898 = vmatprep.mubr.msk.bf16.mxu0 %vm936_vm0, %v935_v1  ;;  %897 = vmatpush3.bf16.msra.mxu0 %v922_v38 }
  0xd9   : > { %v529_v28 = vpop.f32.mrf.mxu1 }
  0xda   : > { %546 = vrot.lane.b32.xlu0 %v529_v28, %s937_s12 }
  0xdb   : > { %v894_v29 = vpop.f32.mrf.mxu1  ;;  %v480_v30 = vpop.f32.mrf.mxu0 }
  0xdd   : > { %v532_v31 = vpop.f32.mrf.mxu1  ;;  %v888_v32 = vpop.f32.mrf.mxu0 }
  0xde   : > { %548 = vrot.lane.b32.xlu0 %v532_v31, %s937_s12 }
  0xdf   : > { %v895_v33 = vpop.f32.mrf.mxu1  ;;  %v483_v34 = vpop.f32.mrf.mxu0 }
  0xe1   : > { %v889_v35 = vpop.f32.mrf.mxu0 }
  0xe2   : > { %540 = vrot.lane.b32.xlu0 %v532_v31, %s938_s13 }
 0x14c   : > { %v547_v36 = vpop.permute.xlu0 %546 }
 0x14d   : > { %v552_v39 = vadd.f32 %v547_v36, %v480_v30 }
 0x150   : > { %v549_v37 = vpop.permute.xlu0 %548 }
 0x151   : > { %v553_v40 = vadd.f32 %v549_v37, %v483_v34 }
 0x153   : > { %v571_v41 = vpack.c.bf16 %v553_v40, %v552_v39 }
 0x154   : > { %v541_v43 = vpop.permute.xlu0 %540 }
 0x155   : > { %573 = vrot.lane.b32.xlu1 %v571_v41, %s938_s13  ;;  %v545_v45 = vsub.f32 %v483_v34, %v541_v43 }
 0x159   : > { %538 = vrot.lane.b32.xlu1 %v529_v28, %s938_s13 }
 0x1c7   : > { %v574_v42 = vpop.permute.xlu1 %573 }
 0x1c8   : > { %576 = vxpose.xlu1.c.b16.start.end [1/1] (short) (narrow) %v574_v42, 16 }
 0x1cb   : > { %v539_v44 = vpop.permute.xlu1 %538 }
 0x1cc   : > { %v544_v46 = vsub.f32 %v480_v30, %v539_v44 }
 0x1ce   : > { %v554_v47 = vpack.c.bf16 %v545_v45, %v544_v46 }
 0x1d0   : > { %555 = vxpose.xlu0.c.b16.start.end [1/1] (short) (narrow) %v554_v47, 16 }
 0x22a   : > { %v584_v48 = vpop.trf.xlu1 }
 0x22b   : > { %905 = vmatmul.mubr.msk.bf16.vlgmr.msra.gmra.mxu1 %vm442_vm1, %v584_v48 }
 0x232   : > { %v563_v49 = vpop.trf.xlu0 }
 0x233   : > { %899 = vmatmul.mubr.msk.bf16.vlgmr.msra.gmra.mxu0 %vm442_vm1, %v563_v49 }
 0x2eb   : > { %v681_v50 = vpop.f32.mrf.mxu1 }
 0x2ec   : > { %698 = vrot.lane.b32.xlu0 %v681_v50, %s937_s12 }
 0x2ed   : > { %v906_v51 = vpop.f32.mrf.mxu1 }
 0x2ef   : > { %v684_v52 = vpop.f32.mrf.mxu1 }
 0x2f0   : > { %700 = vrot.lane.b32.xlu1 %v684_v52, %s937_s12  ;;  %692 = vrot.lane.b32.xlu0 %v684_v52, %s938_s13 }
 0x2f1   : > { %v907_v53 = vpop.f32.mrf.mxu1 }
 0x2f3   : > { %v637_v54 = vpop.f32.mrf.mxu0 }
 0x2f4   : > { %690 = vrot.lane.b32.xlu1 %v681_v50, %s938_s13 }
 0x2f5   : > { %v900_v55 = vpop.f32.mrf.mxu0 }
 0x2f7   : > { %v640_v56 = vpop.f32.mrf.mxu0 }
 0x2f9   : > { %v901_v57 = vpop.f32.mrf.mxu0 }
 0x35e   : > { %v699_v58 = vpop.permute.xlu0 %698 }
 0x35f   : > { %v704_v59 = vadd.f32 %v699_v58, %v637_v54 }
 0x361   : > { %v708_v60 = vmul.f32 %v704_v59, %v704_v59 }
 0x362   : > { %v701_v61 = vpop.permute.xlu1 %700  ;;  %v693_v2 = vpop.permute.xlu0 %692 }
 0x363   : > { %v705_v62 = vadd.f32 %v701_v61, %v640_v56  ;;  %712 = vrot.lane.b32.xlu1 %v708_v60, %s938_s13  ;;  %v697_v3 = vsub.f32 %v640_v56, %v693_v2 }
 0x365   : > { %v709_v63 = vmul.f32 %v705_v62, %v705_v62  ;;  %v707_v7 = vmul.f32 %v697_v3, %v697_v3 }
 0x366   : > { %v691_v0 = vpop.permute.xlu1 %690 }
 0x367   : > { %714 = vrot.lane.b32.xlu0 %v709_v63, %s938_s13  ;;  %v696_v1 = vsub.f32 %v637_v54, %v691_v0 }
 0x369   : > { %v706_v4 = vmul.f32 %v696_v1, %v696_v1 }
 0x3d5   : > { %v713_v5 = vpop.permute.xlu1 %712 }
 0x3d6   : > { %v718_v6 = vadd.f32 %v713_v5, %v706_v4 }
 0x3d8   : > { %923 = vrsqrt.f32 %v718_v6  ;;  %vm722_vm2 = vcmp.eq.f32.partialorder %v718_v6, inf  ;;  %v725_v13 = vand.u32 2147483648, %v718_v6  ;;  %vm724_vm3 = vcmp.eq.f32.partialorder %v718_v6, 0.0 }
 0x3d9   : > { %v715_v8 = vpop.permute.xlu0 %714 }
 0x3da   : > { %v719_v9 = vadd.f32 %v715_v8, %v707_v7 }
 0x3dc   : > { %925 = vrsqrt.f32 %v719_v9  ;;  %vm729_vm4 = vcmp.eq.f32.partialorder %v719_v9, inf  ;;  %v732_v20 = vand.u32 2147483648, %v719_v9  ;;  %vm731_vm5 = vcmp.eq.f32.partialorder %v719_v9, 0.0 }
 0x3e5   : > { %v924_v10 = vpop.eup %923 }
 0x3e6   : > { %v721_v11 = vmul.f32 %v924_v10, %v718_v6 }
 0x3e8   : > { %v723_v14 = vsel %vm722_vm2, %v718_v6, %v721_v11 }
 0x3e9   : > { %v926_v15 = vpop.eup %925  ;;  %v726_v16 = vsel %vm724_vm3, %v725_v13, %v723_v14 }
 0x3ea   : > { %v736_v17 = vsub.f32 %v726_v16, %v734_v12  ;;  %v728_v18 = vmul.f32 %v926_v15, %v719_v9 }
 0x3ec   : > { %v730_v21 = vsel %vm729_vm4, %v719_v9, %v728_v18  ;;  %v738_v23 = vmul.f32 %v736_v17, %v736_v17 }
 0x3ed   : > { %v733_v22 = vsel %vm731_vm5, %v732_v20, %v730_v21 }
 0x3ee   : > { %v737_v24 = vsub.f32 %v733_v22, %v735_v19  ;;  %v740_v26 = vsel %vm442_vm1, %v738_v23, 0.0 }
 0x3f0   : > { %v739_v25 = vmul.f32 %v737_v24, %v737_v24 }
 0x3f2   : > { %v741_v27 = vsel %vm442_vm1, %v739_v25, 0.0 }
 0x3f3   : > { %v742_v28 = vadd.f32 %v741_v27, %v740_v26 }
 0x3f5   : > { %743 = vst.msk [vmem:[%s400_s7] sm:$0xff] %vm442_vm1, %v742_v28 }
 0x3f6 PF: > { %s16_s21 = sadd.s32 1, %s933_s21  }
 0x3f7   : > { %p13_p7 = scmp.ge.s32.totalorder %s16_s21, 4  }
 0x3f9   :  { %15 = sbr.rel (!%p13_p7) target bundleno = 1 (0x1), region = 86 }

</bundles_post_ra>
